<compile_context>
chip_gen: v7x
topology: tpu7x:2x2x1
jax: 0.10.0
libtpu: 0.0.40
codegen_flags: <defaults>
</compile_context>

<pallas_src>
import functools

import jax
import jax.numpy as jnp
from jax.experimental import pallas as pl
from jax.experimental.pallas import tpu as pltpu

BN_EPS = 1e-5     # nn.BatchNorm1d default eps
VAR_EPS = 1e-4    # VICReg std epsilon


# --------------------------- fused VICReg kernel ------------------------------
def vicreg_fused_kernel(x1_ref, x2_ref,           # [B, C*HW] f32 (one per view)
                        params_ref,               # [8, H]  f32 packed slab
                        w_ref,                    # [3, H, H] bf16 weight slab
                        out_ref,                  # SMEM (1,) f32
                        *, batch_size, in_channels, spatial, num_features,
                        sim_coeff, std_coeff, cov_coeff):
    B = batch_size
    C = in_channels
    HW = spatial
    D = num_features

    params = params_ref[...]                      # [8, H] f32, single load

    def dot_bf16(a, w):
        # bf16 MXU inputs, f32 accumulation.
        return jnp.dot(a.astype(jnp.bfloat16), w,
                       preferred_element_type=jnp.float32)

    # ---- stand-in encoder: global-avg-pool + linear (bias dead under BN) ----
    # Per-channel lane reduce, then rank-C broadcast-MAC against the [C, E]
    # weight (rows 0:C of the param slab) -> no HW-inflated weight, no
    # lane-sparse [B, C] intermediate, no tiny-K matmul.
    def encode(x):                                 # x: [B, C*HW] f32
        h = None
        for c in range(C):                         # static unroll, C is tiny
            m = jnp.mean(x[:, c * HW:(c + 1) * HW], axis=-1, keepdims=True)
            t = m * params[c:c + 1, :]             # [B,1] * [1,E] -> [B,E]
            h = t if h is None else h + t
        return h

    h = jnp.concatenate([encode(x1_ref[...]), encode(x2_ref[...])], axis=0)

    # ---- expander: (Linear -> BatchNorm1d(train) -> ReLU) x2 -> Linear(no bias)
    g1, bt1 = params[C:C + 1, :], params[C + 1:C + 2, :]
    g2, bt2 = params[C + 2:C + 3, :], params[C + 3:C + 4, :]

    def bn_relu_per_view(h2d, g, bt):
        hd = h2d.shape[-1]
        hv = h2d.reshape(2, B, hd)                 # per-view batch statistics
        mu = jnp.mean(hv, axis=1, keepdims=True)
        var = jnp.mean((hv - mu) * (hv - mu), axis=1, keepdims=True)  # biased
        scale = g * jax.lax.rsqrt(var + BN_EPS)    # [2,1,H]
        shift = bt - mu * scale                    # fused affine
        return jnp.maximum(hv * scale + shift, 0.0).reshape(2 * B, hd)

    h = bn_relu_per_view(dot_bf16(h, w_ref[0]), g1, bt1)
    h = bn_relu_per_view(dot_bf16(h, w_ref[1]), g2, bt2)
    z = dot_bf16(h, w_ref[2])                      # [2B, D] f32

    # ---- VICReg loss (both views in one pass) --------------------------------
    zv = z.reshape(2, B, D)

    # representation (MSE) loss
    diff = zv[0] - zv[1]
    repr_loss = jnp.mean(diff * diff)

    # center per view; unbiased per-feature variance (torch.var(dim=0))
    zc = zv - jnp.mean(zv, axis=1, keepdims=True)              # [2, B, D]
    var = jnp.sum(zc * zc, axis=1, keepdims=True) / (B - 1)    # [2, 1, D]
    std = jnp.sqrt(var + VAR_EPS)
    # mean(relu(1-std_x))/2 + mean(relu(1-std_y))/2 == mean over both views
    std_loss = jnp.mean(jnp.maximum(1.0 - std, 0.0))

    # covariance loss via BxB Gram (avoids a DxD materialization):
    #   sum_v ||cov_v||_F^2 = sum(G_v^2)/(B-1)^2,  diag(cov_v) = var_v
    gram = jax.lax.dot_general(
        zc, zc, (((2,), (2,)), ((0,), (0,))),
        preferred_element_type=jnp.float32)                    # [2, B, B]
    cov_loss = (jnp.sum(gram * gram) / float((B - 1) ** 2)
                - jnp.sum(var * var)) / float(D)

    out_ref[0] = (sim_coeff * repr_loss
                  + std_coeff * std_loss
                  + cov_coeff * cov_loss)


# ------------------------------- model wrapper --------------------------------
class VICRegPallas:
    """VICReg with a stand-in encoder; everything fused in one Pallas kernel."""

    def __init__(self, batch_size, in_channels=4, image_hw=(16, 16),
                 embedding=128, hidden=128,
                 sim_coeff=25.0, std_coeff=25.0, cov_coeff=1.0, seed=42):
        assert batch_size > 1 and batch_size % 8 == 0, \
            "batch_size must be >1 (BN / (B-1)) and a multiple of 8 sublanes"
        assert embedding == hidden and hidden % 128 == 0, \
            "toy config requires lane-dense embedding == hidden"  # TODO(synk): production 2048->8192 needs per-layer slabs
        self.batch_size = batch_size
        self.num_features = hidden
        self.in_channels = in_channels
        self.image_hw = image_hw

        HW = image_hw[0] * image_hw[1]
        k = jax.random.split(jax.random.PRNGKey(seed), 4)
        f32, bf16 = jnp.float32, jnp.bfloat16

        # -- packed f32 param slab: rows [0:C]=encoder weight, then g1,bt1,g2,bt2
        enc_w = 0.1 * jax.random.normal(k[0], (in_channels, embedding), f32)
        bn_rows = [jnp.ones((1, hidden), f32), jnp.zeros((1, hidden), f32),
                   jnp.ones((1, hidden), f32), jnp.zeros((1, hidden), f32)]
        rows = in_channels + 4
        pad = (-rows) % 8
        pieces = [enc_w] + bn_rows
        if pad:
            pieces.append(jnp.zeros((pad, hidden), f32))
        self.params = jnp.concatenate(pieces, axis=0)          # [8, H] f32

        # -- packed bf16 expander-weight slab [3, H, H]
        w1 = 0.1 * jax.random.normal(k[1], (embedding, hidden), f32)
        w2 = 0.1 * jax.random.normal(k[2], (hidden, hidden), f32)
        w3 = 0.1 * jax.random.normal(k[3], (hidden, hidden), f32)
        self.wslab = jnp.stack([w1, w2, w3], axis=0).astype(bf16)

        kernel = functools.partial(
            vicreg_fused_kernel,
            batch_size=batch_size, in_channels=in_channels, spatial=HW,
            num_features=hidden,
            sim_coeff=float(sim_coeff), std_coeff=float(std_coeff),
            cov_coeff=float(cov_coeff))

        # advisory cost estimate so XLA can schedule around the custom call
        flops = int(2 * (2 * batch_size) * in_channels * embedding
                    + 2 * batch_size * in_channels * HW
                    + 3 * 2 * (2 * batch_size) * hidden * hidden
                    + 2 * 2 * batch_size * batch_size * hidden
                    + 30 * (2 * batch_size) * hidden)
        bytes_acc = int(2 * batch_size * in_channels * HW * 4
                        + self.params.size * 4 + self.wslab.size * 2 + 4)

        fused = pl.pallas_call(
            kernel,
            out_shape=jax.ShapeDtypeStruct((1,), jnp.float32),
            in_specs=[pl.BlockSpec(memory_space=pltpu.MemorySpace.VMEM)] * 4,
            out_specs=pl.BlockSpec(memory_space=pltpu.MemorySpace.SMEM),
            cost_estimate=pl.CostEstimate(flops=flops,
                                          transcendentals=int(6 * hidden),
                                          bytes_accessed=bytes_acc),
        )

        B, C = batch_size, in_channels
        params, wslab = self.params, self.wslab

        @jax.jit
        def forward(v1, v2):
            # free reshapes (contiguous); no host-side concat / cast dispatch
            x1 = v1.reshape(B, C * HW).astype(jnp.float32)
            x2 = v2.reshape(B, C * HW).astype(jnp.float32)
            return fused(x1, x2, params, wslab)[0]

        self._forward = forward

    def __call__(self, view_1, view_2):
        assert view_1.shape == (self.batch_size, self.in_channels,
                                *self.image_hw)
        assert view_2.shape == view_1.shape
        return self._forward(view_1, view_2)


if __name__ == "__main__":
    # small shapes; batch must be >1 (BN / unbiased var) and a multiple of 8.
    B, C, H, W = 8, 4, 16, 16
    key = jax.random.PRNGKey(0)
    k1, k2 = jax.random.split(key)
    view_1 = jax.random.normal(k1, (B, C, H, W), jnp.float32)
    view_2 = jax.random.normal(k2, (B, C, H, W), jnp.float32)

    model = VICRegPallas(batch_size=B, in_channels=C, image_hw=(H, W),
                         embedding=128, hidden=128)
    loss = jax.block_until_ready(model(view_1, view_2))
    assert jnp.isfinite(loss), f"non-finite loss: {loss}"
    print("KERNEL_OK")
</pallas_src>

<mosaic_0001>
module attributes {stable_mosaic.version = 11 : i64} {
  func.func @vicreg_fused_kernel(%arg0: memref<8x1024xf32, #tpu.memory_space<vmem>>, %arg1: memref<8x1024xf32, #tpu.memory_space<vmem>>, %arg2: memref<8x128xf32, #tpu.memory_space<vmem>>, %arg3: memref<3x128x128xbf16, #tpu.memory_space<vmem>>, %arg4: memref<1xf32, #tpu.memory_space<smem>>) attributes {dimension_semantics = [], scalar_prefetch = 0 : i64, scratch_operands = 0 : i64, tpu.core_type = #tpu.core_type<tc>} {
    %c0 = arith.constant 0 : index
    %c0_0 = arith.constant 0 : index
    %0 = vector.load %arg2[%c0, %c0_0] : memref<8x128xf32, #tpu.memory_space<vmem>>, vector<8x128xf32>
    %c0_1 = arith.constant 0 : index
    %c0_2 = arith.constant 0 : index
    %1 = vector.load %arg0[%c0_1, %c0_2] : memref<8x1024xf32, #tpu.memory_space<vmem>>, vector<8x1024xf32>
    %2 = vector.extract_strided_slice %1 {offsets = [0, 0], sizes = [8, 256], strides = [1, 1]} : vector<8x1024xf32> to vector<8x256xf32>
    %cst = arith.constant dense<0.000000e+00> : vector<8xf32>
    %3 = vector.multi_reduction <add>, %2, %cst [1] : vector<8x256xf32> to vector<8xf32>
    %4 = vector.shape_cast %3 : vector<8xf32> to vector<8x1xf32>
    %cst_3 = arith.constant 2.560000e+02 : f32
    %5 = vector.broadcast %cst_3 : f32 to vector<8x1xf32>
    %6 = arith.divf %4, %5 : vector<8x1xf32>
    %7 = vector.extract_strided_slice %0 {offsets = [0, 0], sizes = [1, 128], strides = [1, 1]} : vector<8x128xf32> to vector<1x128xf32>
    %8 = vector.broadcast %6 : vector<8x1xf32> to vector<8x128xf32>
    %9 = vector.broadcast %7 : vector<1x128xf32> to vector<8x128xf32>
    %10 = arith.mulf %8, %9 : vector<8x128xf32>
    %11 = vector.extract_strided_slice %1 {offsets = [0, 256], sizes = [8, 256], strides = [1, 1]} : vector<8x1024xf32> to vector<8x256xf32>
    %cst_4 = arith.constant dense<0.000000e+00> : vector<8xf32>
    %12 = vector.multi_reduction <add>, %11, %cst_4 [1] : vector<8x256xf32> to vector<8xf32>
    %13 = vector.shape_cast %12 : vector<8xf32> to vector<8x1xf32>
    %cst_5 = arith.constant 2.560000e+02 : f32
    %14 = vector.broadcast %cst_5 : f32 to vector<8x1xf32>
    %15 = arith.divf %13, %14 : vector<8x1xf32>
    %16 = vector.extract_strided_slice %0 {offsets = [1, 0], sizes = [1, 128], strides = [1, 1]} : vector<8x128xf32> to vector<1x128xf32>
    %17 = vector.broadcast %15 : vector<8x1xf32> to vector<8x128xf32>
    %18 = vector.broadcast %16 : vector<1x128xf32> to vector<8x128xf32>
    %19 = arith.mulf %17, %18 : vector<8x128xf32>
    %20 = arith.addf %10, %19 : vector<8x128xf32>
    %21 = vector.extract_strided_slice %1 {offsets = [0, 512], sizes = [8, 256], strides = [1, 1]} : vector<8x1024xf32> to vector<8x256xf32>
    %cst_6 = arith.constant dense<0.000000e+00> : vector<8xf32>
    %22 = vector.multi_reduction <add>, %21, %cst_6 [1] : vector<8x256xf32> to vector<8xf32>
    %23 = vector.shape_cast %22 : vector<8xf32> to vector<8x1xf32>
    %cst_7 = arith.constant 2.560000e+02 : f32
    %24 = vector.broadcast %cst_7 : f32 to vector<8x1xf32>
    %25 = arith.divf %23, %24 : vector<8x1xf32>
    %26 = vector.extract_strided_slice %0 {offsets = [2, 0], sizes = [1, 128], strides = [1, 1]} : vector<8x128xf32> to vector<1x128xf32>
    %27 = vector.broadcast %25 : vector<8x1xf32> to vector<8x128xf32>
    %28 = vector.broadcast %26 : vector<1x128xf32> to vector<8x128xf32>
    %29 = arith.mulf %27, %28 : vector<8x128xf32>
    %30 = arith.addf %20, %29 : vector<8x128xf32>
    %31 = vector.extract_strided_slice %1 {offsets = [0, 768], sizes = [8, 256], strides = [1, 1]} : vector<8x1024xf32> to vector<8x256xf32>
    %cst_8 = arith.constant dense<0.000000e+00> : vector<8xf32>
    %32 = vector.multi_reduction <add>, %31, %cst_8 [1] : vector<8x256xf32> to vector<8xf32>
    %33 = vector.shape_cast %32 : vector<8xf32> to vector<8x1xf32>
    %cst_9 = arith.constant 2.560000e+02 : f32
    %34 = vector.broadcast %cst_9 : f32 to vector<8x1xf32>
    %35 = arith.divf %33, %34 : vector<8x1xf32>
    %36 = vector.extract_strided_slice %0 {offsets = [3, 0], sizes = [1, 128], strides = [1, 1]} : vector<8x128xf32> to vector<1x128xf32>
    %37 = vector.broadcast %35 : vector<8x1xf32> to vector<8x128xf32>
    %38 = vector.broadcast %36 : vector<1x128xf32> to vector<8x128xf32>
    %39 = arith.mulf %37, %38 : vector<8x128xf32>
    %40 = arith.addf %30, %39 : vector<8x128xf32>
    %c0_10 = arith.constant 0 : index
    %c0_11 = arith.constant 0 : index
    %41 = vector.load %arg1[%c0_10, %c0_11] : memref<8x1024xf32, #tpu.memory_space<vmem>>, vector<8x1024xf32>
    %42 = vector.extract_strided_slice %41 {offsets = [0, 0], sizes = [8, 256], strides = [1, 1]} : vector<8x1024xf32> to vector<8x256xf32>
    %cst_12 = arith.constant dense<0.000000e+00> : vector<8xf32>
    %43 = vector.multi_reduction <add>, %42, %cst_12 [1] : vector<8x256xf32> to vector<8xf32>
    %44 = vector.shape_cast %43 : vector<8xf32> to vector<8x1xf32>
    %cst_13 = arith.constant 2.560000e+02 : f32
    %45 = vector.broadcast %cst_13 : f32 to vector<8x1xf32>
    %46 = arith.divf %44, %45 : vector<8x1xf32>
    %47 = vector.extract_strided_slice %0 {offsets = [0, 0], sizes = [1, 128], strides = [1, 1]} : vector<8x128xf32> to vector<1x128xf32>
    %48 = vector.broadcast %46 : vector<8x1xf32> to vector<8x128xf32>
    %49 = vector.broadcast %47 : vector<1x128xf32> to vector<8x128xf32>
    %50 = arith.mulf %48, %49 : vector<8x128xf32>
    %51 = vector.extract_strided_slice %41 {offsets = [0, 256], sizes = [8, 256], strides = [1, 1]} : vector<8x1024xf32> to vector<8x256xf32>
    %cst_14 = arith.constant dense<0.000000e+00> : vector<8xf32>
    %52 = vector.multi_reduction <add>, %51, %cst_14 [1] : vector<8x256xf32> to vector<8xf32>
    %53 = vector.shape_cast %52 : vector<8xf32> to vector<8x1xf32>
    %cst_15 = arith.constant 2.560000e+02 : f32
    %54 = vector.broadcast %cst_15 : f32 to vector<8x1xf32>
    %55 = arith.divf %53, %54 : vector<8x1xf32>
    %56 = vector.extract_strided_slice %0 {offsets = [1, 0], sizes = [1, 128], strides = [1, 1]} : vector<8x128xf32> to vector<1x128xf32>
    %57 = vector.broadcast %55 : vector<8x1xf32> to vector<8x128xf32>
    %58 = vector.broadcast %56 : vector<1x128xf32> to vector<8x128xf32>
    %59 = arith.mulf %57, %58 : vector<8x128xf32>
    %60 = arith.addf %50, %59 : vector<8x128xf32>
    %61 = vector.extract_strided_slice %41 {offsets = [0, 512], sizes = [8, 256], strides = [1, 1]} : vector<8x1024xf32> to vector<8x256xf32>
    %cst_16 = arith.constant dense<0.000000e+00> : vector<8xf32>
    %62 = vector.multi_reduction <add>, %61, %cst_16 [1] : vector<8x256xf32> to vector<8xf32>
    %63 = vector.shape_cast %62 : vector<8xf32> to vector<8x1xf32>
    %cst_17 = arith.constant 2.560000e+02 : f32
    %64 = vector.broadcast %cst_17 : f32 to vector<8x1xf32>
    %65 = arith.divf %63, %64 : vector<8x1xf32>
    %66 = vector.extract_strided_slice %0 {offsets = [2, 0], sizes = [1, 128], strides = [1, 1]} : vector<8x128xf32> to vector<1x128xf32>
    %67 = vector.broadcast %65 : vector<8x1xf32> to vector<8x128xf32>
    %68 = vector.broadcast %66 : vector<1x128xf32> to vector<8x128xf32>
    %69 = arith.mulf %67, %68 : vector<8x128xf32>
    %70 = arith.addf %60, %69 : vector<8x128xf32>
    %71 = vector.extract_strided_slice %41 {offsets = [0, 768], sizes = [8, 256], strides = [1, 1]} : vector<8x1024xf32> to vector<8x256xf32>
    %cst_18 = arith.constant dense<0.000000e+00> : vector<8xf32>
    %72 = vector.multi_reduction <add>, %71, %cst_18 [1] : vector<8x256xf32> to vector<8xf32>
    %73 = vector.shape_cast %72 : vector<8xf32> to vector<8x1xf32>
    %cst_19 = arith.constant 2.560000e+02 : f32
    %74 = vector.broadcast %cst_19 : f32 to vector<8x1xf32>
    %75 = arith.divf %73, %74 : vector<8x1xf32>
    %76 = vector.extract_strided_slice %0 {offsets = [3, 0], sizes = [1, 128], strides = [1, 1]} : vector<8x128xf32> to vector<1x128xf32>
    %77 = vector.broadcast %75 : vector<8x1xf32> to vector<8x128xf32>
    %78 = vector.broadcast %76 : vector<1x128xf32> to vector<8x128xf32>
    %79 = arith.mulf %77, %78 : vector<8x128xf32>
    %80 = arith.addf %70, %79 : vector<8x128xf32>
    %81 = tpu.concatenate %40, %80 in 0 : vector<8x128xf32>, vector<8x128xf32> -> vector<16x128xf32>
    %82 = vector.extract_strided_slice %0 {offsets = [4, 0], sizes = [1, 128], strides = [1, 1]} : vector<8x128xf32> to vector<1x128xf32>
    %83 = vector.extract_strided_slice %0 {offsets = [5, 0], sizes = [1, 128], strides = [1, 1]} : vector<8x128xf32> to vector<1x128xf32>
    %84 = vector.extract_strided_slice %0 {offsets = [6, 0], sizes = [1, 128], strides = [1, 1]} : vector<8x128xf32> to vector<1x128xf32>
    %85 = vector.extract_strided_slice %0 {offsets = [7, 0], sizes = [1, 128], strides = [1, 1]} : vector<8x128xf32> to vector<1x128xf32>
    %c0_20 = arith.constant 0 : index
    %c0_21 = arith.constant 0 : index
    %c0_22 = arith.constant 0 : index
    %86 = vector.load %arg3[%c0_20, %c0_21, %c0_22] : memref<3x128x128xbf16, #tpu.memory_space<vmem>>, vector<1x128x128xbf16>
    %87 = vector.shape_cast %86 : vector<1x128x128xbf16> to vector<128x128xbf16>
    %88 = arith.truncf %81 : vector<16x128xf32> to vector<16x128xbf16>
    %cst_23 = arith.constant dense<0.000000e+00> : vector<16x128xf32>
    %89 = tpu.matmul %88, %87, %cst_23 {dimension_numbers = #tpu.dot_dimension_numbers<[1], [0], [0], [1], [0, 0, 1, 1], [], []>} : vector<16x128xbf16>, vector<128x128xbf16>, vector<16x128xf32> -> vector<16x128xf32>
    %90 = vector.shape_cast %89 : vector<16x128xf32> to vector<2x8x128xf32>
    %cst_24 = arith.constant dense<0.000000e+00> : vector<2x128xf32>
    %91 = vector.multi_reduction <add>, %90, %cst_24 [1] : vector<2x8x128xf32> to vector<2x128xf32>
    %92 = vector.shape_cast %91 : vector<2x128xf32> to vector<2x1x128xf32>
    %cst_25 = arith.constant 8.000000e+00 : f32
    %93 = vector.broadcast %cst_25 : f32 to vector<2x1x128xf32>
    %94 = arith.divf %92, %93 : vector<2x1x128xf32>
    %95 = vector.broadcast %94 : vector<2x1x128xf32> to vector<2x8x128xf32>
    %96 = arith.subf %90, %95 : vector<2x8x128xf32>
    %97 = vector.broadcast %94 : vector<2x1x128xf32> to vector<2x8x128xf32>
    %98 = arith.subf %90, %97 : vector<2x8x128xf32>
    %99 = arith.mulf %96, %98 : vector<2x8x128xf32>
    %cst_26 = arith.constant dense<0.000000e+00> : vector<2x128xf32>
    %100 = vector.multi_reduction <add>, %99, %cst_26 [1] : vector<2x8x128xf32> to vector<2x128xf32>
    %101 = vector.shape_cast %100 : vector<2x128xf32> to vector<2x1x128xf32>
    %cst_27 = arith.constant 8.000000e+00 : f32
    %102 = vector.broadcast %cst_27 : f32 to vector<2x1x128xf32>
    %103 = arith.divf %101, %102 : vector<2x1x128xf32>
    %cst_28 = arith.constant 9.99999974E-6 : f32
    %104 = vector.broadcast %cst_28 : f32 to vector<2x1x128xf32>
    %105 = arith.addf %103, %104 : vector<2x1x128xf32>
    %106 = math.rsqrt %105 : vector<2x1x128xf32>
    %107 = vector.shape_cast %82 : vector<1x128xf32> to vector<1x1x128xf32>
    %108 = vector.broadcast %107 : vector<1x1x128xf32> to vector<2x1x128xf32>
    %109 = arith.mulf %108, %106 : vector<2x1x128xf32>
    %110 = arith.mulf %94, %109 : vector<2x1x128xf32>
    %111 = vector.shape_cast %83 : vector<1x128xf32> to vector<1x1x128xf32>
    %112 = vector.broadcast %111 : vector<1x1x128xf32> to vector<2x1x128xf32>
    %113 = arith.subf %112, %110 : vector<2x1x128xf32>
    %114 = vector.broadcast %109 : vector<2x1x128xf32> to vector<2x8x128xf32>
    %115 = arith.mulf %90, %114 : vector<2x8x128xf32>
    %116 = vector.broadcast %113 : vector<2x1x128xf32> to vector<2x8x128xf32>
    %117 = arith.addf %115, %116 : vector<2x8x128xf32>
    %cst_29 = arith.constant 0.000000e+00 : f32
    %118 = vector.broadcast %cst_29 : f32 to vector<2x8x128xf32>
    %119 = arith.maximumf %117, %118 : vector<2x8x128xf32>
    %120 = vector.shape_cast %119 : vector<2x8x128xf32> to vector<16x128xf32>
    %c1 = arith.constant 1 : index
    %c0_30 = arith.constant 0 : index
    %c0_31 = arith.constant 0 : index
    %121 = vector.load %arg3[%c1, %c0_30, %c0_31] : memref<3x128x128xbf16, #tpu.memory_space<vmem>>, vector<1x128x128xbf16>
    %122 = vector.shape_cast %121 : vector<1x128x128xbf16> to vector<128x128xbf16>
    %123 = arith.truncf %120 : vector<16x128xf32> to vector<16x128xbf16>
    %cst_32 = arith.constant dense<0.000000e+00> : vector<16x128xf32>
    %124 = tpu.matmul %123, %122, %cst_32 {dimension_numbers = #tpu.dot_dimension_numbers<[1], [0], [0], [1], [0, 0, 1, 1], [], []>} : vector<16x128xbf16>, vector<128x128xbf16>, vector<16x128xf32> -> vector<16x128xf32>
    %125 = vector.shape_cast %124 : vector<16x128xf32> to vector<2x8x128xf32>
    %cst_33 = arith.constant dense<0.000000e+00> : vector<2x128xf32>
    %126 = vector.multi_reduction <add>, %125, %cst_33 [1] : vector<2x8x128xf32> to vector<2x128xf32>
    %127 = vector.shape_cast %126 : vector<2x128xf32> to vector<2x1x128xf32>
    %cst_34 = arith.constant 8.000000e+00 : f32
    %128 = vector.broadcast %cst_34 : f32 to vector<2x1x128xf32>
    %129 = arith.divf %127, %128 : vector<2x1x128xf32>
    %130 = vector.broadcast %129 : vector<2x1x128xf32> to vector<2x8x128xf32>
    %131 = arith.subf %125, %130 : vector<2x8x128xf32>
    %132 = vector.broadcast %129 : vector<2x1x128xf32> to vector<2x8x128xf32>
    %133 = arith.subf %125, %132 : vector<2x8x128xf32>
    %134 = arith.mulf %131, %133 : vector<2x8x128xf32>
    %cst_35 = arith.constant dense<0.000000e+00> : vector<2x128xf32>
    %135 = vector.multi_reduction <add>, %134, %cst_35 [1] : vector<2x8x128xf32> to vector<2x128xf32>
    %136 = vector.shape_cast %135 : vector<2x128xf32> to vector<2x1x128xf32>
    %cst_36 = arith.constant 8.000000e+00 : f32
    %137 = vector.broadcast %cst_36 : f32 to vector<2x1x128xf32>
    %138 = arith.divf %136, %137 : vector<2x1x128xf32>
    %cst_37 = arith.constant 9.99999974E-6 : f32
    %139 = vector.broadcast %cst_37 : f32 to vector<2x1x128xf32>
    %140 = arith.addf %138, %139 : vector<2x1x128xf32>
    %141 = math.rsqrt %140 : vector<2x1x128xf32>
    %142 = vector.shape_cast %84 : vector<1x128xf32> to vector<1x1x128xf32>
    %143 = vector.broadcast %142 : vector<1x1x128xf32> to vector<2x1x128xf32>
    %144 = arith.mulf %143, %141 : vector<2x1x128xf32>
    %145 = arith.mulf %129, %144 : vector<2x1x128xf32>
    %146 = vector.shape_cast %85 : vector<1x128xf32> to vector<1x1x128xf32>
    %147 = vector.broadcast %146 : vector<1x1x128xf32> to vector<2x1x128xf32>
    %148 = arith.subf %147, %145 : vector<2x1x128xf32>
    %149 = vector.broadcast %144 : vector<2x1x128xf32> to vector<2x8x128xf32>
    %150 = arith.mulf %125, %149 : vector<2x8x128xf32>
    %151 = vector.broadcast %148 : vector<2x1x128xf32> to vector<2x8x128xf32>
    %152 = arith.addf %150, %151 : vector<2x8x128xf32>
    %cst_38 = arith.constant 0.000000e+00 : f32
    %153 = vector.broadcast %cst_38 : f32 to vector<2x8x128xf32>
    %154 = arith.maximumf %152, %153 : vector<2x8x128xf32>
    %155 = vector.shape_cast %154 : vector<2x8x128xf32> to vector<16x128xf32>
    %c2 = arith.constant 2 : index
    %c0_39 = arith.constant 0 : index
    %c0_40 = arith.constant 0 : index
    %156 = vector.load %arg3[%c2, %c0_39, %c0_40] : memref<3x128x128xbf16, #tpu.memory_space<vmem>>, vector<1x128x128xbf16>
    %157 = vector.shape_cast %156 : vector<1x128x128xbf16> to vector<128x128xbf16>
    %158 = arith.truncf %155 : vector<16x128xf32> to vector<16x128xbf16>
    %cst_41 = arith.constant dense<0.000000e+00> : vector<16x128xf32>
    %159 = tpu.matmul %158, %157, %cst_41 {dimension_numbers = #tpu.dot_dimension_numbers<[1], [0], [0], [1], [0, 0, 1, 1], [], []>} : vector<16x128xbf16>, vector<128x128xbf16>, vector<16x128xf32> -> vector<16x128xf32>
    %160 = vector.shape_cast %159 : vector<16x128xf32> to vector<2x8x128xf32>
    %161 = vector.extract_strided_slice %160 {offsets = [0, 0, 0], sizes = [1, 8, 128], strides = [1, 1, 1]} : vector<2x8x128xf32> to vector<1x8x128xf32>
    %162 = vector.shape_cast %161 : vector<1x8x128xf32> to vector<8x128xf32>
    %163 = vector.extract_strided_slice %160 {offsets = [1, 0, 0], sizes = [1, 8, 128], strides = [1, 1, 1]} : vector<2x8x128xf32> to vector<1x8x128xf32>
    %164 = vector.shape_cast %163 : vector<1x8x128xf32> to vector<8x128xf32>
    %165 = arith.subf %162, %164 : vector<8x128xf32>
    %166 = arith.mulf %165, %165 : vector<8x128xf32>
    %167 = vector.shape_cast %166 : vector<8x128xf32> to vector<1x8x128xf32>
    %cst_42 = arith.constant dense<0.000000e+00> : vector<1xf32>
    %168 = vector.multi_reduction <add>, %167, %cst_42 [1, 2] : vector<1x8x128xf32> to vector<1xf32>
    %169 = vector.shape_cast %168 : vector<1xf32> to vector<1x1x1xf32>
    %170 = vector.extract %169[0, 0, 0] : f32 from vector<1x1x1xf32>
    %cst_43 = arith.constant 1.024000e+03 : f32
    %171 = arith.divf %170, %cst_43 : f32
    %cst_44 = arith.constant dense<0.000000e+00> : vector<2x128xf32>
    %172 = vector.multi_reduction <add>, %160, %cst_44 [1] : vector<2x8x128xf32> to vector<2x128xf32>
    %173 = vector.shape_cast %172 : vector<2x128xf32> to vector<2x1x128xf32>
    %cst_45 = arith.constant 8.000000e+00 : f32
    %174 = vector.broadcast %cst_45 : f32 to vector<2x1x128xf32>
    %175 = arith.divf %173, %174 : vector<2x1x128xf32>
    %176 = vector.broadcast %175 : vector<2x1x128xf32> to vector<2x8x128xf32>
    %177 = arith.subf %160, %176 : vector<2x8x128xf32>
    %178 = arith.mulf %177, %177 : vector<2x8x128xf32>
    %cst_46 = arith.constant dense<0.000000e+00> : vector<2x128xf32>
    %179 = vector.multi_reduction <add>, %178, %cst_46 [1] : vector<2x8x128xf32> to vector<2x128xf32>
    %180 = vector.shape_cast %179 : vector<2x128xf32> to vector<2x1x128xf32>
    %cst_47 = arith.constant 7.000000e+00 : f32
    %181 = vector.broadcast %cst_47 : f32 to vector<2x1x128xf32>
    %182 = arith.divf %180, %181 : vector<2x1x128xf32>
    %cst_48 = arith.constant 9.99999974E-5 : f32
    %183 = vector.broadcast %cst_48 : f32 to vector<2x1x128xf32>
    %184 = arith.addf %182, %183 : vector<2x1x128xf32>
    %185 = math.sqrt %184 : vector<2x1x128xf32>
    %cst_49 = arith.constant 1.000000e+00 : f32
    %186 = vector.broadcast %cst_49 : f32 to vector<2x1x128xf32>
    %187 = arith.subf %186, %185 : vector<2x1x128xf32>
    %cst_50 = arith.constant 0.000000e+00 : f32
    %188 = vector.broadcast %cst_50 : f32 to vector<2x1x128xf32>
    %189 = arith.maximumf %187, %188 : vector<2x1x128xf32>
    %190 = vector.shape_cast %189 : vector<2x1x128xf32> to vector<1x2x1x128xf32>
    %cst_51 = arith.constant dense<0.000000e+00> : vector<1xf32>
    %191 = vector.multi_reduction <add>, %190, %cst_51 [1, 2, 3] : vector<1x2x1x128xf32> to vector<1xf32>
    %192 = vector.shape_cast %191 : vector<1xf32> to vector<1x1x1x1xf32>
    %193 = vector.extract %192[0, 0, 0, 0] : f32 from vector<1x1x1x1xf32>
    %cst_52 = arith.constant 2.560000e+02 : f32
    %194 = arith.divf %193, %cst_52 : f32
    %cst_53 = arith.constant dense<0.000000e+00> : vector<2x8x8xf32>
    %195 = tpu.matmul %177, %177, %cst_53 {dimension_numbers = #tpu.dot_dimension_numbers<[2], [2], [1], [1], [0, 0, 0, 1, 1, 1], [0], [0]>} : vector<2x8x128xf32>, vector<2x8x128xf32>, vector<2x8x8xf32> -> vector<2x8x8xf32>
    %196 = arith.mulf %195, %195 : vector<2x8x8xf32>
    %197 = vector.shape_cast %196 : vector<2x8x8xf32> to vector<1x2x8x8xf32>
    %cst_54 = arith.constant dense<0.000000e+00> : vector<1xf32>
    %198 = vector.multi_reduction <add>, %197, %cst_54 [1, 2, 3] : vector<1x2x8x8xf32> to vector<1xf32>
    %199 = vector.shape_cast %198 : vector<1xf32> to vector<1x1x1x1xf32>
    %200 = vector.extract %199[0, 0, 0, 0] : f32 from vector<1x1x1x1xf32>
    %cst_55 = arith.constant 4.900000e+01 : f32
    %201 = arith.divf %200, %cst_55 : f32
    %202 = arith.mulf %182, %182 : vector<2x1x128xf32>
    %203 = vector.shape_cast %202 : vector<2x1x128xf32> to vector<1x2x1x128xf32>
    %cst_56 = arith.constant dense<0.000000e+00> : vector<1xf32>
    %204 = vector.multi_reduction <add>, %203, %cst_56 [1, 2, 3] : vector<1x2x1x128xf32> to vector<1xf32>
    %205 = vector.shape_cast %204 : vector<1xf32> to vector<1x1x1x1xf32>
    %206 = vector.extract %205[0, 0, 0, 0] : f32 from vector<1x1x1x1xf32>
    %207 = arith.subf %201, %206 : f32
    %cst_57 = arith.constant 1.280000e+02 : f32
    %208 = arith.divf %207, %cst_57 : f32
    %cst_58 = arith.constant 2.500000e+01 : f32
    %209 = arith.mulf %cst_58, %171 : f32
    %cst_59 = arith.constant 2.500000e+01 : f32
    %210 = arith.mulf %cst_59, %194 : f32
    %211 = arith.addf %209, %210 : f32
    %cst_60 = arith.constant 1.000000e+00 : f32
    %212 = arith.mulf %cst_60, %208 : f32
    %213 = arith.addf %211, %212 : f32
    %c0_61 = arith.constant 0 : index
    %214 = memref.load %arg4[%c0_61] : memref<1xf32, #tpu.memory_space<smem>>
    memref.store %213, %arg4[%c0_61] : memref<1xf32, #tpu.memory_space<smem>>
    return
  }
}

</mosaic_0001>

<bundles_post_ra>
// kernel: forward.1
= control target key start
LH: loop header
LB: loop body
LE: loop exit
PB: predicated region body
PF: predicated region fallthrough
CT: control target
= control target key end

     0   :  { %v1054_v7 = vmov 0.0   ;;  %s1281_s0 = inlined_call_operand.vmem [shape: f32[8,1024], index: 0, kind: input, shape index: {}]   ;;  %s1282_s1 = inlined_call_operand.vmem [shape: f32[8,1024], index: 1, kind: input, shape index: {}]   ;;  %s1283_s2 = inlined_call_operand.vmem [shape: f32[8,128], index: 2, kind: input, shape index: {}]   ;;  %s1284_s3 = inlined_call_operand.vmem [shape: bf16[3,128,128], index: 3, kind: input, shape index: {}]   ;;  %s1285_s4 = inlined_call_operand.hbm [shape: f32[1], index: 4, kind: output, shape index: {}]  }
   0x1   :  { %v68_v0 = vld [vmem:[%s1282_s1] sm:$0xff]  ;;  %v69_v1 = vld [vmem:[%s1282_s1 + $0x8] sm:$0xff]  ;;  %v70_v5 = vld [vmem:[%s1282_s1 + $0x10] sm:$0xff]  ;;  %925 = vmatprep.subr.bf16.mxu0 %v1054_v7  ;;  %945 = vmatprep.subr.bf16.mxu1 %v1054_v7 }
   0x2   :  { %v20_v2 = vld [vmem:[%s1281_s0] sm:$0xff]  ;;  %v76_v3 = vadd.f32 %v69_v1, %v68_v0  ;;  %v21_v4 = vld [vmem:[%s1281_s0 + $0x8] sm:$0xff]  ;;  %v71_v6 = vld [vmem:[%s1282_s1 + $0x18] sm:$0xff] }
   0x3   :  { %v28_v8 = vadd.f32 %v21_v4, %v20_v2  ;;  %v22_v9 = vld [vmem:[%s1281_s0 + $0x10] sm:$0xff]  ;;  %v23_v10 = vld [vmem:[%s1281_s0 + $0x18] sm:$0xff]  ;;  %v81_v11 = vadd.f32 %v71_v6, %v70_v5  ;;  %v72_v13 = vld [vmem:[%s1282_s1 + $0x20] sm:$0xff] }
   0x4   :  { %77 = vadd.xlane.f32.xlu1 %v76_v3  ;;  %v38_v12 = vadd.f32 %v23_v10, %v22_v9  ;;  %v73_v14 = vld [vmem:[%s1282_s1 + $0x28] sm:$0xff]  ;;  %v24_v15 = vld [vmem:[%s1281_s0 + $0x20] sm:$0xff]  ;;  %v74_v17 = vld [vmem:[%s1282_s1 + $0x30] sm:$0xff] }
   0x5   :  { %29 = vadd.xlane.f32.xlu0 %v28_v8  ;;  %v25_v16 = vld [vmem:[%s1281_s0 + $0x28] sm:$0xff]  ;;  %v75_v18 = vld [vmem:[%s1282_s1 + $0x38] sm:$0xff]  ;;  %v1006_v19 = vld [vmem:[%s1284_s3] sm:$0xff]   ;;  %v87_v20 = vadd.f32 %v73_v14, %v72_v13 }
   0x6   :  { %v26_v21 = vld [vmem:[%s1281_s0 + $0x30] sm:$0xff]  ;;  %v27_v22 = vld [vmem:[%s1281_s0 + $0x38] sm:$0xff]  ;;  %v48_v23 = vadd.f32 %v25_v16, %v24_v15  ;;  %926 = vmatpush3.bf16.msra.mxu0 %v1006_v19  ;;  %v1007_v24 = vld [vmem:[%s1284_s3 + $0x8] sm:$0xff]   ;;  %v93_v26 = vadd.f32 %v75_v18, %v74_v17 }
   0x7   :  { %927 = vmatprep.subr.bf16.mxu0 %v1054_v7  ;;  %v1008_v25 = vld [vmem:[%s1284_s3 + $0x10] sm:$0xff]   ;;  %v58_v27 = vadd.f32 %v27_v22, %v26_v21  ;;  %v1009_v28 = vld [vmem:[%s1284_s3 + $0x18] sm:$0xff]   ;;  %v1010_v29 = vld [vmem:[%s1284_s3 + $0x20] sm:$0xff]  }
   0x8   :  { %82 = vadd.xlane.f32.xlu1 %v81_v11 }
   0x9   :  { %39 = vadd.xlane.f32.xlu0 %v38_v12 }
   0xa   :  { %928 = vmatpush3.bf16.msra.mxu0 %v1007_v24 }
   0xb   :  { %929 = vmatprep.subr.bf16.mxu0 %v1054_v7 }
   0xc   :  { %88 = vadd.xlane.f32.xlu1 %v87_v20 }
   0xd   :  { %49 = vadd.xlane.f32.xlu0 %v48_v23 }
   0xe   :  { %930 = vmatpush3.bf16.msra.mxu0 %v1008_v25 }
   0xf   :  { %931 = vmatprep.subr.bf16.mxu0 %v1054_v7 }
  0x10   :  { %94 = vadd.xlane.f32.xlu1 %v93_v26 }
  0x11   :  { %59 = vadd.xlane.f32.xlu0 %v58_v27 }
  0x12   :  { %932 = vmatpush3.bf16.msra.mxu0 %v1009_v28 }
  0x13   :  { %933 = vmatprep.subr.bf16.mxu0 %v1054_v7 }
  0x16   :  { %934 = vmatpush3.bf16.msra.mxu0 %v1010_v29 }
  0x17   :  { %9 = vsyncpa [#allocation3], 0  ;;  %935 = vmatprep.subr.bf16.mxu0 %v1054_v7  ;;  %v1011_v30 = vld [vmem:[%s1284_s3 + $0x28] sm:$0xff]   ;;  %v1012_v31 = vld [vmem:[%s1284_s3 + $0x30] sm:$0xff]   ;;  %vm1055_vm0 = vmmov 0   ;;  %v33_v33 = vlaneseq  ;;  %vm627_vm1 = vcmask 1040384  }
  0x18   :  { %v1013_v32 = vld [vmem:[%s1284_s3 + $0x38] sm:$0xff]   ;;  %941 = vmatprep.mubr.msk.bf16.mxu0 %vm1055_vm0, %v1054_v7  ;;  %961 = vmatprep.mubr.msk.bf16.mxu1 %vm1055_vm0, %v1054_v7  ;;  %v1176_v40 = vld [vmem:[%s1283_s2] sm:$0xff]  ;;  %v1015_v13 = vld [vmem:[%s1284_s3 + $0x48] sm:$0xff]   ;;  %vm785_vm6 = vcmask 64512   ;;  %s1042_s0 = scalar_lea.hbm %s1285_s4, 16 }
  0x19   :  { %v1168_v34 = vshrl.u32 %v33_v33, 7  ;;  %v1014_v12 = vld [vmem:[%s1284_s3 + $0x40] sm:$0xff]   ;;  %v1016_v14 = vld [vmem:[%s1284_s3 + $0x50] sm:$0xff]   ;;  %v1017_v15 = vld [vmem:[%s1284_s3 + $0x58] sm:$0xff]   ;;  %p1043_p0 = scmp.ne.s32.totalorder %s1285_s4, %s1042_s0  ;;  %p1046_p1 = scmp.lt.u32.totalorder %s1042_s0, %s1285_s4 }
  0x1a   :  { %936 = vmatpush3.bf16.msra.mxu0 %v1011_v30  ;;  %946 = vmatpush3.bf16.msra.mxu1 %v1014_v12  ;;  %v1018_v16 = vld [vmem:[%s1284_s3 + $0x60] sm:$0xff]   ;;  %v1019_v17 = vld [vmem:[%s1284_s3 + $0x68] sm:$0xff]   ;;  %v1020_v18 = vld [vmem:[%s1284_s3 + $0x70] sm:$0xff]  }
  0x1b   :  { %937 = vmatprep.subr.bf16.mxu0 %v1054_v7  ;;  %v44_v37 = vsub.s32 1, %v1168_v34  ;;  %v35_v38 = vsub.s32 0, %v1168_v34  ;;  %v54_v39 = vsub.s32 2, %v1168_v34  ;;  %v64_v49 = vsub.s32 3, %v1168_v34  ;;  %947 = vmatprep.subr.bf16.mxu1 %v1054_v7  ;;  %v1021_v19 = vld [vmem:[%s1284_s3 + $0x78] sm:$0xff]   ;;  %p1048_p2 = pnand %p1046_p1, %p1043_p0 }
  0x1d   :  { %v45_v42 = vrot.slane %v1176_v40, %v44_v37  ;;  %v36_v46 = vrot.slane %v1176_v40, %v35_v38  ;;  %v55_v48 = vrot.slane %v1176_v40, %v54_v39  ;;  %v65_v59 = vrot.slane %v1176_v40, %v64_v49 }
  0x1e   :  { %938 = vmatpush3.bf16.msra.mxu0 %v1012_v31  ;;  %948 = vmatpush3.bf16.msra.mxu1 %v1015_v13 }
  0x1f   :  { %939 = vmatprep.subr.bf16.mxu0 %v1054_v7  ;;  %949 = vmatprep.subr.bf16.mxu1 %v1054_v7 }
  0x22   :  { %940 = vmatpush3.bf16.msra.mxu0 %v1013_v32  ;;  %950 = vmatpush3.bf16.msra.mxu1 %v1016_v14 }
  0x23   :  { %965 = vmatprep.subr.bf16.mxu0 %v1054_v7  ;;  %951 = vmatprep.subr.bf16.mxu1 %v1054_v7 }
  0x26   :  { %952 = vmatpush3.bf16.msra.mxu1 %v1017_v15 }
  0x27   :  { %953 = vmatprep.subr.bf16.mxu1 %v1054_v7 }
  0x2a   :  { %954 = vmatpush3.bf16.msra.mxu1 %v1018_v16 }
  0x2b   :  { %955 = vmatprep.subr.bf16.mxu1 %v1054_v7 }
  0x2e   :  { %956 = vmatpush3.bf16.msra.mxu1 %v1019_v17 }
  0x2f   :  { %957 = vmatprep.subr.bf16.mxu1 %v1054_v7 }
  0x32   :  { %958 = vmatpush3.bf16.msra.mxu1 %v1020_v18 }
  0x33   :  { %959 = vmatprep.subr.bf16.mxu1 %v1054_v7 }
  0x36   :  { %960 = vmatpush3.bf16.msra.mxu1 %v1021_v19 }
  0x37   :  { %985 = vmatprep.subr.mxu1 %v1054_v7 }
  0x91   :  { %v78_v35 = vpop.xlane.xlu1 %77 }
  0x92   :  { %v30_v36 = vpop.xlane.xlu0 %29  ;;  %v79_v47 = vmul.f32 0.00390625, %v78_v35 }
  0x93   :  { %v32_v50 = vmul.f32 0.00390625, %v30_v36 }
  0x94   :  { %v80_v57 = vmul.f32 %v79_v47, %v36_v46 }
  0x95   :  { %v83_v41 = vpop.xlane.xlu1 %82  ;;  %v37_v60 = vmul.f32 %v36_v46, %v32_v50 }
  0x96   :  { %v84_v43 = vmul.f32 0.00390625, %v83_v41  ;;  %v40_v44 = vpop.xlane.xlu0 %39 }
  0x97   :  { %v41_v45 = vmul.f32 0.00390625, %v40_v44 }
  0x98   :  { %v85_v52 = vmul.f32 %v84_v43, %v45_v42 }
  0x99   :  { %v89_v51 = vpop.xlane.xlu1 %88  ;;  %v46_v55 = vmul.f32 %v45_v42, %v41_v45 }
  0x9a   :  { %v90_v53 = vmul.f32 0.00390625, %v89_v51  ;;  %v50_v54 = vpop.xlane.xlu0 %49  ;;  %v86_v63 = vadd.f32 %v85_v52, %v80_v57 }
  0x9b   :  { %v51_v56 = vmul.f32 0.00390625, %v50_v54  ;;  %v47_v2 = vadd.f32 %v46_v55, %v37_v60 }
  0x9c   :  { %v91_v58 = vmul.f32 %v90_v53, %v55_v48 }
  0x9d   :  { %v56_v61 = vmul.f32 %v55_v48, %v51_v56  ;;  %v95_v62 = vpop.xlane.xlu1 %94 }
  0x9e   :  { %v96_v0 = vmul.f32 0.00390625, %v95_v62  ;;  %v60_v1 = vpop.xlane.xlu0 %59  ;;  %v92_v4 = vadd.f32 %v91_v58, %v86_v63  ;;  %v256_v62 = vsub.s32 4, %v1168_v34 }
  0x9f   :  { %v61_v3 = vmul.f32 0.00390625, %v60_v1  ;;  %v57_v6 = vadd.f32 %v56_v61, %v47_v2 }
  0xa0   :  { %v97_v5 = vmul.f32 %v96_v0, %v65_v59 }
  0xa1   :  { %v66_v8 = vmul.f32 %v65_v59, %v61_v3 }
  0xa2   :  { %v98_v9 = vadd.f32 %v97_v5, %v92_v4  ;;  %v266_v5 = vsub.s32 5, %v1168_v34 }
  0xa3   :  { %v67_v10 = vadd.f32 %v66_v8, %v57_v6 }
  0xa5   :  { %v115_v11 = vpack.c.bf16 %v98_v9, %v67_v10 }
  0xa7   :  { %942 = vmatmul.mubr.bf16.vlgmr.msra.gmra.mrb[0].mxu0 %v115_v11 }
  0xa8   :  { %981 = vmatprep.mubr.msk.bf16.mxu0 %vm1055_vm0, %v1054_v7 }
 0x17a   :  { %v198_v20 = vpop.f32.mrb[0].mxu0 }
 0x17b   :  { %v205_v21 = vrot.slane %v198_v20, 4  ;;  %v943_v22 = vpop.f32.mrb[1].mxu0 }
 0x17c   :  { %v201_v23 = vpop.f32.mrb[2].mxu0  ;;  %v1024_v22 = vld [vmem:[%s1284_s3 + $0x90] sm:$0xff]  }
 0x17d   :  { %v206_v24 = vadd.f32 %v205_v21, %v198_v20  ;;  %v211_v25 = vrot.slane %v201_v23, 4  ;;  %v944_v26 = vpop.f32.mrb[3].mxu0  ;;  %v1022_v21 = vld [vmem:[%s1284_s3 + $0x80] sm:$0xff]  }
 0x17e   :  { %966 = vmatpush3.bf16.msra.mxu0 %v1022_v21  ;;  %v1028_v26 = vld [vmem:[%s1284_s3 + $0xb0] sm:$0xff]  }
 0x17f   :  { %v207_v27 = vrot.slane %v206_v24, 2  ;;  %v212_v28 = vadd.f32 %v211_v25, %v201_v23  ;;  %967 = vmatprep.subr.bf16.mxu0 %v1054_v7  ;;  %v1027_v25 = vld [vmem:[%s1284_s3 + $0xa8] sm:$0xff]  }
 0x181   :  { %v208_v29 = vadd.f32 %v207_v27, %v206_v24  ;;  %v213_v30 = vrot.slane %v212_v28, 2  ;;  %v1026_v24 = vld [vmem:[%s1284_s3 + $0xa0] sm:$0xff]   ;;  %v1029_v27 = vld [vmem:[%s1284_s3 + $0xb8] sm:$0xff]  }
 0x183   :  { %v209_v31 = vrot.slane %v208_v29, 1  ;;  %v214_v32 = vadd.f32 %v213_v30, %v212_v28 }
 0x185   :  { %v210_v33 = vadd.f32 %v209_v31, %v208_v29  ;;  %v215_v35 = vrot.slane %v214_v32, 1 }
 0x187   :  { %v218_v36 = vmul.f32 0.125, %v210_v33  ;;  %v216_v37 = vadd.f32 %v215_v35, %v214_v32 }
 0x189   :  { %v220_v38 = vsub.f32 %v198_v20, %v218_v36  ;;  %v219_v39 = vmul.f32 0.125, %v216_v37 }
 0x18b   :  { %v222_v41 = vmul.f32 %v220_v38, %v220_v38  ;;  %v221_v42 = vsub.f32 %v201_v23, %v219_v39 }
 0x18d   :  { %v224_v43 = vrot.slane %v222_v41, 4  ;;  %v223_v44 = vmul.f32 %v221_v42, %v221_v42 }
 0x18f   :  { %v225_v45 = vadd.f32 %v224_v43, %v222_v41  ;;  %v230_v46 = vrot.slane %v223_v44, 4 }
 0x191   :  { %v226_v47 = vrot.slane %v225_v45, 2  ;;  %v231_v48 = vadd.f32 %v230_v46, %v223_v44 }
 0x193   :  { %v227_v49 = vadd.f32 %v226_v47, %v225_v45  ;;  %v232_v50 = vrot.slane %v231_v48, 2 }
 0x195   :  { %v228_v51 = vrot.slane %v227_v49, 1  ;;  %v233_v52 = vadd.f32 %v232_v50, %v231_v48 }
 0x197   :  { %v229_v53 = vadd.f32 %v228_v51, %v227_v49  ;;  %v234_v54 = vrot.slane %v233_v52, 1 }
 0x199   :  { %v236_v55 = vmul.f32 0.125, %v229_v53  ;;  %v235_v56 = vadd.f32 %v234_v54, %v233_v52 }
 0x19b   :  { %v238_v57 = vadd.f32 1e-05, %v236_v55  ;;  %v237_v58 = vmul.f32 0.125, %v235_v56 }
 0x19d   :  { %1030 = vrsqrt.f32 %v238_v57  ;;  %v239_v59 = vadd.f32 1e-05, %v237_v58 }
 0x19f   :  { %1032 = vrsqrt.f32 %v239_v59 }
 0x1a7   :  { %v1031_v60 = vpop.eup %1030 }
 0x1a8   :  { %v242_v61 = vmul.f32 %v1031_v60, %v1176_v40 }
 0x1a9   :  { %v1033_v63 = vpop.eup %1032 }
 0x1aa   :  { %v244_v0 = vmul.f32 %v242_v61, %v218_v36  ;;  %v243_v1 = vmul.f32 %v1033_v63, %v1176_v40  ;;  %v257_v3 = vrot.slane %v242_v61, %v256_v62 }
 0x1ac   :  { %v248_v2 = vrot.slane %v244_v0, 7  ;;  %v245_v4 = vmul.f32 %v243_v1, %v219_v39  ;;  %v261_v8 = vrot.slane %v243_v1, %v256_v62  ;;  %v262_v10 = vmul.f32 %v257_v3, %v198_v20  ;;  %v1023_v20 = vld [vmem:[%s1284_s3 + $0x88] sm:$0xff]  }
 0x1ad   :  { %968 = vmatpush3.bf16.msra.mxu0 %v1023_v20 }
 0x1ae   :  { %v249_v6 = vrot.slane %v245_v4, 7  ;;  %v252_v9 = vsub.f32 %v1176_v40, %v248_v2  ;;  %v263_v13 = vmul.f32 %v261_v8, %v201_v23  ;;  %969 = vmatprep.subr.bf16.mxu0 %v1054_v7  ;;  %v1025_v23 = vld [vmem:[%s1284_s3 + $0x98] sm:$0xff]  }
 0x1b0   :  { %v253_v11 = vsub.f32 %v1176_v40, %v249_v6  ;;  %v267_v12 = vrot.slane %v252_v9, %v266_v5  ;;  %v433_v6 = vsub.s32 6, %v1168_v34 }
 0x1b1   :  { %970 = vmatpush3.bf16.msra.mxu0 %v1024_v22 }
 0x1b2   :  { %v271_v14 = vrot.slane %v253_v11, %v266_v5  ;;  %v272_v15 = vadd.f32 %v267_v12, %v262_v10  ;;  %971 = vmatprep.subr.bf16.mxu0 %v1054_v7 }
 0x1b4   :  { %v273_v16 = vadd.f32 %v271_v14, %v263_v13  ;;  %v274_v17 = vmax.f32 %v272_v15, 0.0  ;;  %v443_v13 = vsub.s32 7, %v1168_v34 }
 0x1b5   :  { %972 = vmatpush3.bf16.msra.mxu0 %v1025_v23 }
 0x1b6   :  { %v275_v18 = vmax.f32 %v273_v16, 0.0  ;;  %973 = vmatprep.subr.bf16.mxu0 %v1054_v7 }
 0x1b8   :  { %v293_v19 = vpack.c.bf16 %v275_v18, %v274_v17 }
 0x1b9   :  { %974 = vmatpush3.bf16.msra.mxu0 %v1026_v24 }
 0x1ba   :  { %962 = vmatmul.mubr.bf16.vlgmr.msra.gmra.mrb[0].mxu1 %v293_v19  ;;  %975 = vmatprep.subr.bf16.mxu0 %v1054_v7 }
 0x1bb   :  { %987 = vmatprep.mubr.msk.f32.mxu1 %vm1055_vm0, %v1054_v7 }
 0x1bd   :  { %976 = vmatpush3.bf16.msra.mxu0 %v1027_v25 }
 0x1be   :  { %977 = vmatprep.subr.bf16.mxu0 %v1054_v7 }
 0x1c1   :  { %978 = vmatpush3.bf16.msra.mxu0 %v1028_v26 }
 0x1c2   :  { %979 = vmatprep.subr.bf16.mxu0 %v1054_v7 }
 0x1c5   :  { %980 = vmatpush3.bf16.msra.mxu0 %v1029_v27 }
 0x28d   :  { %v376_v28 = vpop.f32.mrb[0].mxu1 }
 0x28e   :  { %v383_v29 = vrot.slane %v376_v28, 4  ;;  %v963_v30 = vpop.f32.mrb[1].mxu1 }
 0x28f   :  { %v379_v31 = vpop.f32.mrb[2].mxu1 }
 0x290   :  { %v384_v32 = vadd.f32 %v383_v29, %v376_v28  ;;  %v389_v33 = vrot.slane %v379_v31, 4  ;;  %v964_v35 = vpop.f32.mrb[3].mxu1 }
 0x292   :  { %v385_v36 = vrot.slane %v384_v32, 2  ;;  %v390_v37 = vadd.f32 %v389_v33, %v379_v31 }
 0x294   :  { %v386_v38 = vadd.f32 %v385_v36, %v384_v32  ;;  %v391_v39 = vrot.slane %v390_v37, 2 }
 0x296   :  { %v387_v41 = vrot.slane %v386_v38, 1  ;;  %v392_v42 = vadd.f32 %v391_v39, %v390_v37 }
 0x298   :  { %v388_v43 = vadd.f32 %v387_v41, %v386_v38  ;;  %v393_v44 = vrot.slane %v392_v42, 1 }
 0x29a   :  { %v395_v45 = vmul.f32 0.125, %v388_v43  ;;  %v394_v46 = vadd.f32 %v393_v44, %v392_v42 }
 0x29c   :  { %v397_v47 = vsub.f32 %v376_v28, %v395_v45  ;;  %v396_v48 = vmul.f32 0.125, %v394_v46 }
 0x29e   :  { %v399_v49 = vmul.f32 %v397_v47, %v397_v47  ;;  %v398_v50 = vsub.f32 %v379_v31, %v396_v48 }
 0x2a0   :  { %v401_v51 = vrot.slane %v399_v49, 4  ;;  %v400_v52 = vmul.f32 %v398_v50, %v398_v50 }
 0x2a2   :  { %v402_v53 = vadd.f32 %v401_v51, %v399_v49  ;;  %v407_v54 = vrot.slane %v400_v52, 4 }
 0x2a4   :  { %v403_v55 = vrot.slane %v402_v53, 2  ;;  %v408_v56 = vadd.f32 %v407_v54, %v400_v52 }
 0x2a6   :  { %v404_v57 = vadd.f32 %v403_v55, %v402_v53  ;;  %v409_v58 = vrot.slane %v408_v56, 2 }
 0x2a8   :  { %v405_v59 = vrot.slane %v404_v57, 1  ;;  %v410_v60 = vadd.f32 %v409_v58, %v408_v56 }
 0x2aa   :  { %v406_v61 = vadd.f32 %v405_v59, %v404_v57  ;;  %v411_v62 = vrot.slane %v410_v60, 1 }
 0x2ac   :  { %v413_v63 = vmul.f32 0.125, %v406_v61  ;;  %v412_v0 = vadd.f32 %v411_v62, %v410_v60 }
 0x2ae   :  { %v415_v1 = vadd.f32 1e-05, %v413_v63  ;;  %v414_v2 = vmul.f32 0.125, %v412_v0 }
 0x2b0   :  { %1034 = vrsqrt.f32 %v415_v1  ;;  %v416_v3 = vadd.f32 1e-05, %v414_v2 }
 0x2b2   :  { %1036 = vrsqrt.f32 %v416_v3 }
 0x2ba   :  { %v1035_v4 = vpop.eup %1034 }
 0x2bb   :  { %v419_v5 = vmul.f32 %v1035_v4, %v1176_v40 }
 0x2bc   :  { %v1037_v8 = vpop.eup %1036 }
 0x2bd   :  { %v421_v9 = vmul.f32 %v419_v5, %v395_v45  ;;  %v420_v10 = vmul.f32 %v1037_v8, %v1176_v40  ;;  %v434_v12 = vrot.slane %v419_v5, %v433_v6 }
 0x2bf   :  { %v425_v11 = vrot.slane %v421_v9, 7  ;;  %v422_v14 = vmul.f32 %v420_v10, %v396_v48  ;;  %v438_v17 = vrot.slane %v420_v10, %v433_v6  ;;  %v439_v18 = vmul.f32 %v434_v12, %v376_v28 }
 0x2c1   :  { %v429_v15 = vsub.f32 %v1176_v40, %v425_v11  ;;  %v426_v16 = vrot.slane %v422_v14, 7  ;;  %v440_v22 = vmul.f32 %v438_v17, %v379_v31 }
 0x2c3   :  { %v444_v19 = vrot.slane %v429_v15, %v443_v13  ;;  %v430_v21 = vsub.f32 %v1176_v40, %v426_v16 }
 0x2c5   :  { %v449_v20 = vadd.f32 %v444_v19, %v439_v18  ;;  %v448_v23 = vrot.slane %v430_v21, %v443_v13 }
 0x2c7   :  { %v450_v24 = vadd.f32 %v448_v23, %v440_v22  ;;  %v451_v25 = vmax.f32 %v449_v20, 0.0 }
 0x2c9   :  { %v452_v26 = vmax.f32 %v450_v24, 0.0 }
 0x2cb   :  { %v470_v27 = vpack.c.bf16 %v452_v26, %v451_v25 }
 0x2cd   :  { %982 = vmatmul.mubr.bf16.vlgmr.msra.gmra.mrb[4].mxu0 %v470_v27 }
 0x3a0   :  { %v553_v29 = vpop.f32.mrb[4].mxu0 }
 0x3a1   :  { %v574_v30 = vrot.slane %v553_v29, 4  ;;  %v983_v34 = vpop.f32.mrb[5].mxu0 }
 0x3a2   :  { %v556_v32 = vpop.f32.mrb[6].mxu0 }
 0x3a3   :  { %v575_v33 = vadd.f32 %v574_v30, %v553_v29  ;;  %v580_v35 = vrot.slane %v556_v32, 4  ;;  %v984_v36 = vpop.f32.mrb[7].mxu0  ;;  %v560_v37 = vsub.f32 %v553_v29, %v556_v32 }
 0x3a5   :  { %v576_v28 = vrot.slane %v575_v33, 2  ;;  %v581_v38 = vadd.f32 %v580_v35, %v556_v32  ;;  %v561_v39 = vmul.f32 %v560_v37, %v560_v37 }
 0x3a7   :  { %v577_v40 = vadd.f32 %v576_v28, %v575_v33  ;;  %v582_v41 = vrot.slane %v581_v38, 2  ;;  %562 = vadd.xlane.f32.xlu0 %v561_v39 }
 0x3a9   :  { %v578_v31 = vrot.slane %v577_v40, 1  ;;  %v583_v42 = vadd.f32 %v582_v41, %v581_v38 }
 0x3ab   :  { %v579_v43 = vadd.f32 %v578_v31, %v577_v40  ;;  %v584_v44 = vrot.slane %v583_v42, 1 }
 0x3ad   :  { %v586_v45 = vmul.f32 0.125, %v579_v43  ;;  %v585_v46 = vadd.f32 %v584_v44, %v583_v42 }
 0x3af   :  { %v588_v47 = vsub.f32 %v553_v29, %v586_v45  ;;  %v587_v48 = vmul.f32 0.125, %v585_v46 }
 0x3b1   :  { %v590_v49 = vmul.f32 %v588_v47, %v588_v47  ;;  %v589_v50 = vsub.f32 %v556_v32, %v587_v48  ;;  %986 = vmatpush3.xpose.msra.mxu1 %v588_v47 }
 0x3b2   :  { %990 = vmatprep.subr.mxu1 %v1054_v7 }
 0x3b3   :  { %v592_v51 = vrot.slane %v590_v49, 4  ;;  %v591_v52 = vmul.f32 %v589_v50, %v589_v50 }
 0x3b4   :  { %988 = vmatmul.mubr.f32.vlgmr.msra.gmra.mrb[4].mxu1 %v588_v47 }
 0x3b5   :  { %v593_v53 = vadd.f32 %v592_v51, %v590_v49  ;;  %v598_v54 = vrot.slane %v591_v52, 4  ;;  %991 = vmatpush3.xpose.msra.mxu1 %v589_v50  ;;  %992 = vmatprep.mubr.msk.f32.mxu1 %vm1055_vm0, %v1054_v7 }
 0x3b7   :  { %v594_v55 = vrot.slane %v593_v53, 2  ;;  %v599_v56 = vadd.f32 %v598_v54, %v591_v52 }
 0x3b8   :  { %993 = vmatmul.mubr.f32.vlgmr.msra.gmra.mrb[6].mxu1 %v589_v50 }
 0x3b9   :  { %v595_v57 = vadd.f32 %v594_v55, %v593_v53  ;;  %v600_v58 = vrot.slane %v599_v56, 2 }
 0x3bb   :  { %v596_v59 = vrot.slane %v595_v57, 1  ;;  %v601_v60 = vadd.f32 %v600_v58, %v599_v56 }
 0x3bd   :  { %v597_v61 = vadd.f32 %v596_v59, %v595_v57  ;;  %v602_v62 = vrot.slane %v601_v60, 1 }
 0x3bf   :  { %v605_v63 = vmul.f32 0.14285715, %v597_v61  ;;  %v603_v0 = vadd.f32 %v602_v62, %v601_v60 }
 0x3c1   :  { %v607_v1 = vadd.f32 0.0001, %v605_v63  ;;  %v606_v2 = vmul.f32 0.14285715, %v603_v0  ;;  %v801_v3 = vmul.f32 %v605_v63, %v605_v63 }
 0x3c3   :  { %v608_v4 = vadd.f32 0.0001, %v606_v2  ;;  %1038 = vrsqrt.f32 %v607_v1  ;;  %v802_v5 = vmul.f32 %v606_v2, %v606_v2  ;;  %v803_v7 = vsel %vm627_vm1, %v801_v3, 0.0 }
 0x3c4   :  { %vm611_vm2 = vcmp.eq.f32.partialorder %v607_v1, inf  ;;  %v614_v12 = vand.u32 2147483648, %v607_v1  ;;  %vm613_vm3 = vcmp.eq.f32.partialorder %v607_v1, 0.0 }
 0x3c5   :  { %1040 = vrsqrt.f32 %v608_v4  ;;  %v804_v6 = vsel %vm627_vm1, %v802_v5, 0.0  ;;  %vm618_vm4 = vcmp.eq.f32.partialorder %v608_v4, inf  ;;  %v621_v16 = vand.u32 2147483648, %v608_v4 }
 0x3c6   :  { %v805_v8 = vadd.f32 %v804_v6, %v803_v7  ;;  %vm620_vm5 = vcmp.eq.f32.partialorder %v608_v4, 0.0 }
 0x3cd   :  { %v1039_v9 = vpop.eup %1038 }
 0x3ce   :  { %v610_v10 = vmul.f32 %v1039_v9, %v607_v1 }
 0x3cf   :  { %v1041_v11 = vpop.eup %1040 }
 0x3d0   :  { %v612_v13 = vsel %vm611_vm2, %v607_v1, %v610_v10  ;;  %v617_v14 = vmul.f32 %v1041_v11, %v608_v4 }
 0x3d1   :  { %v615_v15 = vsel %vm613_vm3, %v614_v12, %v612_v13 }
 0x3d2   :  { %v619_v17 = vsel %vm618_vm4, %v608_v4, %v617_v14  ;;  %v623_v18 = vsub.f32 1.0, %v615_v15 }
 0x3d3   :  { %v622_v19 = vsel %vm620_vm5, %v621_v16, %v619_v17 }
 0x3d4   :  { %v624_v21 = vsub.f32 1.0, %v622_v19  ;;  %v625_v20 = vmax.f32 %v623_v18, 0.0 }
 0x3d6   :  { %v626_v22 = vmax.f32 %v624_v21, 0.0  ;;  %v628_v23 = vsel %vm627_vm1, %v625_v20, 0.0 }
 0x3d8   :  { %v629_v24 = vsel %vm627_vm1, %v626_v22, 0.0 }
 0x3d9   :  { %v630_v25 = vadd.f32 %v629_v24, %v628_v23 }
 0x3db   :  { %631 = vadd.xlane.f32.xlu1 %v630_v25 }
 0x3df   :  { %806 = vadd.xlane.f32.xlu1 %v805_v8 }
 0x434   :  { %v563_v26 = vpop.xlane.xlu0 %562 }
 0x435   :  { %v564_v27 = vrot.slane %v563_v26, 4 }
 0x437   :  { %v565_v29 = vadd.f32 %v564_v27, %v563_v26 }
 0x439   :  { %v566_v30 = vrot.slane %v565_v29, 2 }
 0x43b   :  { %v567_v34 = vadd.f32 %v566_v30, %v565_v29 }
 0x43d   :  { %v568_v32 = vrot.slane %v567_v34, 1 }
 0x43f   :  { %v569_v33 = vadd.f32 %v568_v32, %v567_v34 }
 0x441   :  { %995 = vpush %v569_v33 }
 0x468   :  { %v632_v35 = vpop.xlane.xlu1 %631 }
 0x469   :  { %v633_v36 = vrot.slane %v632_v35, 4 }
 0x46b   :  { %v634_v37 = vadd.f32 %v633_v36, %v632_v35 }
 0x46c   :  { %v807_v49 = vpop.xlane.xlu1 %806 }
 0x46d   :  { %v635_v28 = vrot.slane %v634_v37, 2  ;;  %v808_v50 = vrot.slane %v807_v49, 4 }
 0x46f   :  { %v636_v38 = vadd.f32 %v635_v28, %v634_v37  ;;  %v809_v51 = vadd.f32 %v808_v50, %v807_v49 }
 0x471   :  { %v637_v39 = vrot.slane %v636_v38, 1  ;;  %v810_v52 = vrot.slane %v809_v51, 2 }
 0x472   :  { %s996_s3 = spop %995 }
 0x473   :  { %v638_v40 = vadd.f32 %v637_v39, %v636_v38  ;;  %v811_v56 = vadd.f32 %v810_v52, %v809_v51  ;;  %s573_s15 = smul.f32 0.0009765625, %s996_s3 }
 0x475   :  { %997 = vpush %v638_v40  ;;  %v812_v59 = vrot.slane %v811_v56, 1  ;;  %s819_s20 = smul.f32 25.0, %s573_s15 }
 0x477   :  { %v813_v62 = vadd.f32 %v812_v59, %v811_v56 }
 0x487   :  { %v709_v41 = vpop.f32.mrb[4].mxu1 }
 0x488   :  { %v989_v31 = vpop.f32.mrb[5].mxu1  ;;  %v783_v42 = vmul.f32 %v709_v41, %v709_v41 }
 0x48a   :  { %v786_v46 = vsel %vm785_vm6, %v783_v42, 0.0 }
 0x48b   :  { %v779_v43 = vpop.f32.mrb[6].mxu1 }
 0x48c   :  { %v784_v44 = vmul.f32 %v779_v43, %v779_v43  ;;  %v994_v45 = vpop.f32.mrb[7].mxu1 }
 0x48e   :  { %v787_v47 = vsel %vm785_vm6, %v784_v44, 0.0 }
 0x48f   :  { %v788_v48 = vadd.f32 %v787_v47, %v786_v46 }
 0x491   :  { %789 = vadd.xlane.f32.xlu0 %v788_v48 }
 0x4a6   :  { %s998_s13 = spop %997 }
 0x4a7   :  { %s642_s14 = smul.f32 0.00390625, %s998_s13 }
 0x4a9   :  { %s820_s16 = smul.f32 25.0, %s642_s14 }
 0x4ab   :  { %s821_s22 = sadd.f32 %s820_s16, %s819_s20 }
 0x51e   :  { %v790_v53 = vpop.xlane.xlu0 %789 }
 0x51f   :  { %v791_v54 = vrot.slane %v790_v53, 4 }
 0x521   :  { %v792_v55 = vadd.f32 %v791_v54, %v790_v53 }
 0x523   :  { %v793_v57 = vrot.slane %v792_v55, 2 }
 0x525   :  { %v794_v58 = vadd.f32 %v793_v57, %v792_v55 }
 0x527   :  { %v795_v60 = vrot.slane %v794_v58, 1 }
 0x529   :  { %v796_v61 = vadd.f32 %v795_v60, %v794_v58 }
 0x52b   :  { %999 = vpush %v796_v61 }
 0x52c   :  { %1001 = vpush %v813_v62 }
 0x55c   :  { %s1000_s17 = spop %999 }
 0x55d   :  { %s800_s18 = smul.f32 0.020408163, %s1000_s17  ;;  %s1002_s19 = spop %1001 }
 0x55f   :  { %s815_s21 = ssub.f32 %s800_s18, %s1002_s19 }
 0x561   :  { %s818_s23 = smul.f32 0.0078125, %s815_s21 }
 0x563   :  { %s822_s24 = sadd.f32 %s821_s22, %s818_s23 }
 0x565   :  { %824 = sst [smem:[#allocation2]] %s822_s24 }
 0x566   :  { %1051 = shalt.err (!%p1048_p2)
}
 0x567   :  { %s1056_s30 = smov [#allocation2]  }
 0x568   :  { %832 = dma.smem_to_hbm %s1056_s30, 16, %s1285_s4, [#allocation3]  }
 0x569   :  { %1052 = dma.done.wait [#allocation3], 16  }
 0x56a   :  { %1053 = vsyncadd [#allocation3], 4294967280 }
 0x56b   :  { %836 = sfence }
 0x56c   :  { %837 = vsyncpa [#allocation3], 1 }

</bundles_post_ra>
